<compile_context>
chip_gen: v6e
topology: v6e:2x2x1
jax: 0.10.0
libtpu: 0.0.40
codegen_flags: <defaults>
</compile_context>

<pallas_src>
import jax
import jax.numpy as jnp
from jax.experimental import pallas as pl
from jax.experimental.pallas import tpu as pltpu

INPUT_DIM = 4
EMB_DIM = 128
LATENT_DIM = 512
CAT_DIM = EMB_DIM + LATENT_DIM   # 640
HIDDEN_DIM = 512
OUTPUT_DIM = 4
PAD_OUT = 128                    # lane-dense padded output width
MAX_TILE_B = 512                 # batch tile (multiple of 8)


def arm_config_kernel(q_ref, lat_ref,
                      wq_ref, bq_ref,
                      w1a_ref, w1b_ref, b1_ref,
                      w2_ref, b2_ref,
                      o_ref):
    # ---- fc_q_init + ReLU: K=4 contraction done as 4 VPU broadcast-FMAs ----
    q = q_ref[...]                                   # (TB, 4)  f32
    wq = wq_ref[...]                                 # (4, 128) f32
    q_emb = bq_ref[...] + q[:, 0:1] * wq[0:1, :]     # (TB, 128)
    for k in range(1, INPUT_DIM):                    # statically unrolled
        q_emb = q_emb + q[:, k:k + 1] * wq[k:k + 1, :]
    q_emb = jnp.maximum(q_emb, 0.0)

    # ---- fc1 on concat([q_emb, latent]) + ReLU (bf16 operands, f32 acc) ----
    h = (jnp.dot(q_emb.astype(jnp.bfloat16), w1a_ref[...],
                 preferred_element_type=jnp.float32)
         + jnp.dot(lat_ref[...].astype(jnp.bfloat16), w1b_ref[...],
                   preferred_element_type=jnp.float32)
         + b1_ref[...])
    h = jnp.maximum(h, 0.0)                          # (TB, 512) f32

    # ---- fc2 (lane-dense padded to 128 output columns) ----
    out = jnp.dot(h.astype(jnp.bfloat16), w2_ref[...],
                  preferred_element_type=jnp.float32) + b2_ref[...]
    o_ref[...] = out.astype(o_ref.dtype)             # (TB, 128)


def arm_config_predictor(q_H_init, latent_vector, params, *, tile_b=MAX_TILE_B):
    """q_H_init: [B, 4] f32, latent_vector: [B, 512] f32 -> [B, 4] f32."""
    B = q_H_init.shape[0]

    # --- parameter preparation (wrapper-side glue, plain JAX) ---
    wq = params["wq"].astype(jnp.float32)                       # (4, 128)
    bq = params["bq"].reshape(1, -1).astype(jnp.float32)        # (1, 128)
    w1 = params["w1"]
    w1a = w1[:EMB_DIM, :].astype(jnp.bfloat16)                  # (128, 512)
    w1b = w1[EMB_DIM:, :].astype(jnp.bfloat16)                  # (512, 512)
    b1 = params["b1"].reshape(1, -1).astype(jnp.float32)        # (1, 512)
    w2p = jnp.zeros((HIDDEN_DIM, PAD_OUT), jnp.float32)
    w2p = w2p.at[:, :OUTPUT_DIM].set(params["w2"]).astype(jnp.bfloat16)
    b2p = jnp.zeros((1, PAD_OUT), jnp.float32)
    b2p = b2p.at[0, :OUTPUT_DIM].set(params["b2"])

    # --- batch tiling (TB multiple of 8; pad batch to a whole number of tiles) ---
    TB = min(tile_b, max(8, ((B + 7) // 8) * 8))
    TB = ((TB + 7) // 8) * 8
    num_tiles = pl.cdiv(B, TB)
    B_pad = num_tiles * TB
    if B_pad != B:
        pad = B_pad - B
        q = jnp.pad(q_H_init, ((0, pad), (0, 0)))
        lat = jnp.pad(latent_vector, ((0, pad), (0, 0)))
    else:
        q, lat = q_H_init, latent_vector

    in_specs = [
        pl.BlockSpec((TB, INPUT_DIM), lambda i: (i, 0)),          # q (streamed)
        pl.BlockSpec((TB, LATENT_DIM), lambda i: (i, 0)),         # latent (streamed)
        pl.BlockSpec((INPUT_DIM, EMB_DIM), lambda i: (0, 0)),     # wq (resident)
        pl.BlockSpec((1, EMB_DIM), lambda i: (0, 0)),             # bq
        pl.BlockSpec((EMB_DIM, HIDDEN_DIM), lambda i: (0, 0)),    # w1a
        pl.BlockSpec((LATENT_DIM, HIDDEN_DIM), lambda i: (0, 0)), # w1b
        pl.BlockSpec((1, HIDDEN_DIM), lambda i: (0, 0)),          # b1
        pl.BlockSpec((HIDDEN_DIM, PAD_OUT), lambda i: (0, 0)),    # w2 (padded)
        pl.BlockSpec((1, PAD_OUT), lambda i: (0, 0)),             # b2 (padded)
    ]
    out_spec = pl.BlockSpec((TB, PAD_OUT), lambda i: (i, 0))

    flops = 2 * B_pad * (INPUT_DIM * EMB_DIM
                         + CAT_DIM * HIDDEN_DIM
                         + HIDDEN_DIM * OUTPUT_DIM)
    bytes_accessed = (
        wq.size * 4 + bq.size * 4 + b1.size * 4 + b2p.size * 4
        + w1a.size * 2 + w1b.size * 2 + w2p.size * 2
        + q.size * 4 + lat.size * 4 + B_pad * PAD_OUT * 4)
    cost = pl.CostEstimate(flops=flops, transcendentals=0,
                           bytes_accessed=bytes_accessed)

    out_full = pl.pallas_call(
        arm_config_kernel,
        out_shape=jax.ShapeDtypeStruct((B_pad, PAD_OUT), jnp.float32),
        grid=(num_tiles,),
        in_specs=in_specs,
        out_specs=out_spec,
        compiler_params=pltpu.CompilerParams(
            dimension_semantics=("parallel",)),
        cost_estimate=cost,
    )(q, lat, wq, bq, w1a, w1b, b1, w2p, b2p)

    return out_full[:B, :OUTPUT_DIM]


def init_params(key):
    """Deterministic init mimicking PyTorch nn.Linear defaults
    (uniform(-1/sqrt(fan_in), 1/sqrt(fan_in))). Weights stored as [in, out]."""
    ks = jax.random.split(key, 6)

    def linear(kw, kb, fan_in, fan_out):
        bound = 1.0 / jnp.sqrt(jnp.asarray(fan_in, jnp.float32))
        w = jax.random.uniform(kw, (fan_in, fan_out), jnp.float32, -bound, bound)
        b = jax.random.uniform(kb, (fan_out,), jnp.float32, -bound, bound)
        return w, b

    wq, bq = linear(ks[0], ks[1], INPUT_DIM, EMB_DIM)
    w1, b1 = linear(ks[2], ks[3], CAT_DIM, HIDDEN_DIM)
    w2, b2 = linear(ks[4], ks[5], HIDDEN_DIM, OUTPUT_DIM)
    return dict(wq=wq, bq=bq, w1=w1, b1=b1, w2=w2, b2=b2)


def reference_forward(q, lat, p):
    """Pure-JAX f32 reference of the PyTorch module."""
    q_emb = jnp.maximum(q @ p["wq"] + p["bq"], 0.0)
    x = jnp.concatenate([q_emb, lat], axis=1)
    x = jnp.maximum(x @ p["w1"] + p["b1"], 0.0)
    return x @ p["w2"] + p["b2"]


if __name__ == "__main__":
    key = jax.random.PRNGKey(0)
    kp, kq, kl = jax.random.split(key, 3)

    B = 8
    params = init_params(kp)
    q_H_init = jax.random.normal(kq, (B, INPUT_DIM), jnp.float32)
    latent_vector = jax.random.normal(kl, (B, LATENT_DIM), jnp.float32)

    out = arm_config_predictor(q_H_init, latent_vector, params)
    out = jax.block_until_ready(out)

    # f32 reference; kernel uses bf16 matmul operands (f32 accumulate), so
    # allow a bf16-sized tolerance.
    ref = reference_forward(q_H_init, latent_vector, params)
    assert out.shape == (B, OUTPUT_DIM)
    assert jnp.allclose(out, ref, atol=5e-2, rtol=5e-2), "mismatch vs reference"

    print("KERNEL_OK")
</pallas_src>

<mosaic_0001>
module attributes {stable_mosaic.version = 11 : i64} {
  func.func @arm_config_kernel(%arg0: i32, %arg1: memref<8x4xf32, #tpu.memory_space<vmem>>, %arg2: memref<8x512xf32, #tpu.memory_space<vmem>>, %arg3: memref<4x128xf32, #tpu.memory_space<vmem>>, %arg4: memref<1x128xf32, #tpu.memory_space<vmem>>, %arg5: memref<128x512xbf16, #tpu.memory_space<vmem>>, %arg6: memref<512x512xbf16, #tpu.memory_space<vmem>>, %arg7: memref<1x512xf32, #tpu.memory_space<vmem>>, %arg8: memref<512x128xbf16, #tpu.memory_space<vmem>>, %arg9: memref<1x128xf32, #tpu.memory_space<vmem>>, %arg10: memref<8x128xf32, #tpu.memory_space<vmem>>) attributes {dimension_semantics = [#tpu.dimension_semantics<parallel>], iteration_bounds = array<i64: 1>, scalar_prefetch = 0 : i64, scratch_operands = 0 : i64, tpu.core_type = #tpu.core_type<tc>, window_params = [{transform_indices = @transform_0, window_bounds = array<i64: 8, 4>}, {transform_indices = @transform_1, window_bounds = array<i64: 8, 512>}, {pipeline_mode = #tpu.pipeline_mode<synchronous>, transform_indices = @transform_2, window_bounds = array<i64: 4, 128>}, {pipeline_mode = #tpu.pipeline_mode<synchronous>, transform_indices = @transform_3, window_bounds = array<i64: 1, 128>}, {pipeline_mode = #tpu.pipeline_mode<synchronous>, transform_indices = @transform_4, window_bounds = array<i64: 128, 512>}, {pipeline_mode = #tpu.pipeline_mode<synchronous>, transform_indices = @transform_5, window_bounds = array<i64: 512, 512>}, {pipeline_mode = #tpu.pipeline_mode<synchronous>, transform_indices = @transform_6, window_bounds = array<i64: 1, 512>}, {pipeline_mode = #tpu.pipeline_mode<synchronous>, transform_indices = @transform_7, window_bounds = array<i64: 512, 128>}, {pipeline_mode = #tpu.pipeline_mode<synchronous>, transform_indices = @transform_8, window_bounds = array<i64: 1, 128>}, {transform_indices = @transform_9, window_bounds = array<i64: 8, 128>}]} {
    %c0 = arith.constant 0 : index
    %c0_0 = arith.constant 0 : index
    %0 = vector.load %arg1[%c0, %c0_0] : memref<8x4xf32, #tpu.memory_space<vmem>>, vector<8x4xf32>
    %c0_1 = arith.constant 0 : index
    %c0_2 = arith.constant 0 : index
    %1 = vector.load %arg3[%c0_1, %c0_2] : memref<4x128xf32, #tpu.memory_space<vmem>>, vector<4x128xf32>
    %c0_3 = arith.constant 0 : index
    %c0_4 = arith.constant 0 : index
    %2 = vector.load %arg4[%c0_3, %c0_4] : memref<1x128xf32, #tpu.memory_space<vmem>>, vector<1x128xf32>
    %3 = vector.extract_strided_slice %0 {offsets = [0, 0], sizes = [8, 1], strides = [1, 1]} : vector<8x4xf32> to vector<8x1xf32>
    %4 = vector.extract_strided_slice %1 {offsets = [0, 0], sizes = [1, 128], strides = [1, 1]} : vector<4x128xf32> to vector<1x128xf32>
    %5 = vector.broadcast %3 : vector<8x1xf32> to vector<8x128xf32>
    %6 = vector.broadcast %4 : vector<1x128xf32> to vector<8x128xf32>
    %7 = arith.mulf %5, %6 : vector<8x128xf32>
    %8 = vector.broadcast %2 : vector<1x128xf32> to vector<8x128xf32>
    %9 = arith.addf %8, %7 : vector<8x128xf32>
    %10 = vector.extract_strided_slice %0 {offsets = [0, 1], sizes = [8, 1], strides = [1, 1]} : vector<8x4xf32> to vector<8x1xf32>
    %11 = vector.extract_strided_slice %1 {offsets = [1, 0], sizes = [1, 128], strides = [1, 1]} : vector<4x128xf32> to vector<1x128xf32>
    %12 = vector.broadcast %10 : vector<8x1xf32> to vector<8x128xf32>
    %13 = vector.broadcast %11 : vector<1x128xf32> to vector<8x128xf32>
    %14 = arith.mulf %12, %13 : vector<8x128xf32>
    %15 = arith.addf %9, %14 : vector<8x128xf32>
    %16 = vector.extract_strided_slice %0 {offsets = [0, 2], sizes = [8, 1], strides = [1, 1]} : vector<8x4xf32> to vector<8x1xf32>
    %17 = vector.extract_strided_slice %1 {offsets = [2, 0], sizes = [1, 128], strides = [1, 1]} : vector<4x128xf32> to vector<1x128xf32>
    %18 = vector.broadcast %16 : vector<8x1xf32> to vector<8x128xf32>
    %19 = vector.broadcast %17 : vector<1x128xf32> to vector<8x128xf32>
    %20 = arith.mulf %18, %19 : vector<8x128xf32>
    %21 = arith.addf %15, %20 : vector<8x128xf32>
    %22 = vector.extract_strided_slice %0 {offsets = [0, 3], sizes = [8, 1], strides = [1, 1]} : vector<8x4xf32> to vector<8x1xf32>
    %23 = vector.extract_strided_slice %1 {offsets = [3, 0], sizes = [1, 128], strides = [1, 1]} : vector<4x128xf32> to vector<1x128xf32>
    %24 = vector.broadcast %22 : vector<8x1xf32> to vector<8x128xf32>
    %25 = vector.broadcast %23 : vector<1x128xf32> to vector<8x128xf32>
    %26 = arith.mulf %24, %25 : vector<8x128xf32>
    %27 = arith.addf %21, %26 : vector<8x128xf32>
    %cst = arith.constant 0.000000e+00 : f32
    %28 = vector.broadcast %cst : f32 to vector<8x128xf32>
    %29 = arith.maximumf %27, %28 : vector<8x128xf32>
    %30 = arith.truncf %29 : vector<8x128xf32> to vector<8x128xbf16>
    %c0_5 = arith.constant 0 : index
    %c0_6 = arith.constant 0 : index
    %31 = vector.load %arg5[%c0_5, %c0_6] : memref<128x512xbf16, #tpu.memory_space<vmem>>, vector<128x512xbf16>
    %cst_7 = arith.constant dense<0.000000e+00> : vector<8x512xf32>
    %32 = tpu.matmul %30, %31, %cst_7 {dimension_numbers = #tpu.dot_dimension_numbers<[1], [0], [0], [1], [0, 0, 1, 1], [], []>} : vector<8x128xbf16>, vector<128x512xbf16>, vector<8x512xf32> -> vector<8x512xf32>
    %c0_8 = arith.constant 0 : index
    %c0_9 = arith.constant 0 : index
    %33 = vector.load %arg2[%c0_8, %c0_9] : memref<8x512xf32, #tpu.memory_space<vmem>>, vector<8x512xf32>
    %34 = arith.truncf %33 : vector<8x512xf32> to vector<8x512xbf16>
    %c0_10 = arith.constant 0 : index
    %c0_11 = arith.constant 0 : index
    %35 = vector.load %arg6[%c0_10, %c0_11] : memref<512x512xbf16, #tpu.memory_space<vmem>>, vector<512x512xbf16>
    %cst_12 = arith.constant dense<0.000000e+00> : vector<8x512xf32>
    %36 = tpu.matmul %34, %35, %cst_12 {dimension_numbers = #tpu.dot_dimension_numbers<[1], [0], [0], [1], [0, 0, 1, 1], [], []>} : vector<8x512xbf16>, vector<512x512xbf16>, vector<8x512xf32> -> vector<8x512xf32>
    %37 = arith.addf %32, %36 : vector<8x512xf32>
    %c0_13 = arith.constant 0 : index
    %c0_14 = arith.constant 0 : index
    %38 = vector.load %arg7[%c0_13, %c0_14] : memref<1x512xf32, #tpu.memory_space<vmem>>, vector<1x512xf32>
    %39 = vector.broadcast %38 : vector<1x512xf32> to vector<8x512xf32>
    %40 = arith.addf %37, %39 : vector<8x512xf32>
    %cst_15 = arith.constant 0.000000e+00 : f32
    %41 = vector.broadcast %cst_15 : f32 to vector<8x512xf32>
    %42 = arith.maximumf %40, %41 : vector<8x512xf32>
    %43 = arith.truncf %42 : vector<8x512xf32> to vector<8x512xbf16>
    %c0_16 = arith.constant 0 : index
    %c0_17 = arith.constant 0 : index
    %44 = vector.load %arg8[%c0_16, %c0_17] : memref<512x128xbf16, #tpu.memory_space<vmem>>, vector<512x128xbf16>
    %cst_18 = arith.constant dense<0.000000e+00> : vector<8x128xf32>
    %45 = tpu.matmul %43, %44, %cst_18 {dimension_numbers = #tpu.dot_dimension_numbers<[1], [0], [0], [1], [0, 0, 1, 1], [], []>} : vector<8x512xbf16>, vector<512x128xbf16>, vector<8x128xf32> -> vector<8x128xf32>
    %c0_19 = arith.constant 0 : index
    %c0_20 = arith.constant 0 : index
    %46 = vector.load %arg9[%c0_19, %c0_20] : memref<1x128xf32, #tpu.memory_space<vmem>>, vector<1x128xf32>
    %47 = vector.broadcast %46 : vector<1x128xf32> to vector<8x128xf32>
    %48 = arith.addf %45, %47 : vector<8x128xf32>
    %c0_21 = arith.constant 0 : index
    %c0_22 = arith.constant 0 : index
    %49 = vector.load %arg10[%c0_21, %c0_22] : memref<8x128xf32, #tpu.memory_space<vmem>>, vector<8x128xf32>
    tpu.vector_store %arg10[%c0_21, %c0_22], %48 {strides = array<i32>} : memref<8x128xf32, #tpu.memory_space<vmem>>, vector<8x128xf32>,
    return
  }
  func.func @transform_0(%arg0: i32) -> (i32, i32) {
    %c0_i32 = arith.constant 0 : i32
    %c0_i32_0 = arith.constant 0 : i32
    return %arg0, %c0_i32 : i32, i32
  }
  func.func @transform_1(%arg0: i32) -> (i32, i32) {
    %c0_i32 = arith.constant 0 : i32
    %c0_i32_0 = arith.constant 0 : i32
    return %arg0, %c0_i32 : i32, i32
  }
  func.func @transform_2(%arg0: i32) -> (i32, i32) {
    %c0_i32 = arith.constant 0 : i32
    %c0_i32_0 = arith.constant 0 : i32
    %c0_i32_1 = arith.constant 0 : i32
    return %c0_i32, %c0_i32_0 : i32, i32
  }
  func.func @transform_3(%arg0: i32) -> (i32, i32) {
    %c0_i32 = arith.constant 0 : i32
    %c0_i32_0 = arith.constant 0 : i32
    %c0_i32_1 = arith.constant 0 : i32
    return %c0_i32, %c0_i32_0 : i32, i32
  }
  func.func @transform_4(%arg0: i32) -> (i32, i32) {
    %c0_i32 = arith.constant 0 : i32
    %c0_i32_0 = arith.constant 0 : i32
    %c0_i32_1 = arith.constant 0 : i32
    return %c0_i32, %c0_i32_0 : i32, i32
  }
  func.func @transform_5(%arg0: i32) -> (i32, i32) {
    %c0_i32 = arith.constant 0 : i32
    %c0_i32_0 = arith.constant 0 : i32
    %c0_i32_1 = arith.constant 0 : i32
    return %c0_i32, %c0_i32_0 : i32, i32
  }
  func.func @transform_6(%arg0: i32) -> (i32, i32) {
    %c0_i32 = arith.constant 0 : i32
    %c0_i32_0 = arith.constant 0 : i32
    %c0_i32_1 = arith.constant 0 : i32
    return %c0_i32, %c0_i32_0 : i32, i32
  }
  func.func @transform_7(%arg0: i32) -> (i32, i32) {
    %c0_i32 = arith.constant 0 : i32
    %c0_i32_0 = arith.constant 0 : i32
    %c0_i32_1 = arith.constant 0 : i32
    return %c0_i32, %c0_i32_0 : i32, i32
  }
  func.func @transform_8(%arg0: i32) -> (i32, i32) {
    %c0_i32 = arith.constant 0 : i32
    %c0_i32_0 = arith.constant 0 : i32
    %c0_i32_1 = arith.constant 0 : i32
    return %c0_i32, %c0_i32_0 : i32, i32
  }
  func.func @transform_9(%arg0: i32) -> (i32, i32) {
    %c0_i32 = arith.constant 0 : i32
    %c0_i32_0 = arith.constant 0 : i32
    return %arg0, %c0_i32 : i32, i32
  }
}

</mosaic_0001>

<bundles_post_ra>
// kernel: tpu_custom_call.1
= control target key start
LH: loop header
LB: loop body
LE: loop exit
PB: predicated region body
PF: predicated region fallthrough
CT: control target
= control target key end

     0   :  { %14 = vsyncpa [#allocation3], 0  ;;  %s2510_s0 = inlined_call_operand.vmem [shape: f32[8,4], index: 0, kind: input, shape index: {}]   ;;  %s2511_s1 = inlined_call_operand.hbm [shape: f32[8,512], index: 1, kind: input, shape index: {}]   ;;  %s2512_s2 = inlined_call_operand.vmem [shape: f32[4,128], index: 2, kind: input, shape index: {}]   ;;  %s2513_s3 = inlined_call_operand.vmem [shape: f32[1,128], index: 3, kind: input, shape index: {}]   ;;  %s2514_s4 = inlined_call_operand.hbm [shape: bf16[128,512], index: 4, kind: input, shape index: {}]   ;;  %s2515_s5 = inlined_call_operand.hbm [shape: bf16[512,512], index: 5, kind: input, shape index: {}]   ;;  %s2516_s6 = inlined_call_operand.vmem [shape: f32[1,512], index: 6, kind: input, shape index: {}]   ;;  %s2517_s7 = inlined_call_operand.hbm [shape: bf16[512,128], index: 7, kind: input, shape index: {}]   ;;  %s2518_s8 = inlined_call_operand.vmem [shape: f32[1,128], index: 8, kind: input, shape index: {}]   ;;  %s2519_s9 = inlined_call_operand.hbm [shape: f32[8,128], index: 9, kind: output, shape index: {}]  }
   0x1   :  { %15 = vsyncpa [#allocation6], 0 }
   0x2   :  { %16 = vsyncpa [#allocation9], 0 }
   0x3   :  { %17 = vsyncpa [#allocation4], 0  ;;  %s2384_s30 = smov [#allocation5]  }
   0x4   :  { %s39_s10 = sshll.u32 %s2384_s30, 4  ;;  %s40_s10 = int_to_ptr.vmem [resolvable:$true] %s39_s10 }
   0x5   :  { %s2284_s11 = scalar_lea.vmem %s40_s10, 4096  ;;  %p2289_p1 = scmp.lt.s32.totalorder %s40_s10, %s40_s10 }
   0x6   :  { %p2285_p0 = scmp.ne.s32.totalorder %s40_s10, %s2284_s11  ;;  %p2290_p2 = scmp.lt.s32.totalorder %s2284_s11, %s2284_s11 }
   0x8   :  { %p2291_p3 = por %p2290_p2, %p2289_p1 }
   0xa   :  { %p2292_p4 = pnand %p2291_p3, %p2285_p0 }
   0xc   :  { %2295 = shalt.err (!%p2292_p4)
}
   0xd   :  { %s2385_s12 = smov 256   ;;  %s2386_s13 = smov 16  }
   0xe   :  { %45 = dma.hbm_to_vmem [thread:$0]  %s2514_s4, 4096, %s40_s10, [#allocation6], %s2385_s12, %s2385_s12, %s2386_s13  }
   0xf   :  { %s2387_s16 = smov [#allocation2]   ;;  %s2388_s18 = smov [#allocation7]  }
  0x10   :  { %s26_s17 = sshll.u32 %s2387_s16, 4  ;;  %s51_s19 = sshll.u32 %s2388_s18, 4  ;;  %s27_s17 = int_to_ptr.vmem [resolvable:$true] %s26_s17  ;;  %s52_s19 = int_to_ptr.vmem [resolvable:$true] %s51_s19 }
  0x11   :  { %s2304_s20 = scalar_lea.vmem %s27_s17, 512  ;;  %p2309_p6 = scmp.lt.s32.totalorder %s27_s17, %s27_s17 }
  0x12   :  { %p2305_p5 = scmp.ne.s32.totalorder %s27_s17, %s2304_s20  ;;  %p2310_p7 = scmp.lt.s32.totalorder %s2304_s20, %s2304_s20 }
  0x14   :  { %p2311_p8 = por %p2310_p7, %p2309_p6 }
  0x16   :  { %p2312_p9 = pnand %p2311_p8, %p2305_p5 }
  0x18   :  { %2315 = shalt.err (!%p2312_p9)
}
  0x19   :  { %29 = dma.hbm_to_vmem [thread:$0]  %s2511_s1, 512, %s27_s17, [#allocation3]  }
  0x1a   :  { %s2324_s23 = scalar_lea.vmem %s52_s19, 16384  ;;  %p2329_p11 = scmp.lt.s32.totalorder %s52_s19, %s52_s19 }
  0x1b   :  { %p2325_p10 = scmp.ne.s32.totalorder %s52_s19, %s2324_s23  ;;  %p2330_p12 = scmp.lt.s32.totalorder %s2324_s23, %s2324_s23 }
  0x1d   :  { %p2331_p13 = por %p2330_p12, %p2329_p11 }
  0x1f   :  { %p2332_p0 = pnand %p2331_p13, %p2325_p10 }
  0x21   :  { %2335 = shalt.err (!%p2332_p0)
}
  0x22   :  { %57 = dma.hbm_to_vmem [thread:$0]  %s2515_s5, 16384, %s52_s19, [#allocation6], %s2385_s12, %s2385_s12, %s2386_s13  }
  0x23   :  { %s2389_s25 = smov [#allocation8]  }
  0x24   :  { %s65_s26 = sshll.u32 %s2389_s25, 4  ;;  %s66_s26 = int_to_ptr.vmem [resolvable:$true] %s65_s26 }
  0x25   :  { %s2344_s27 = scalar_lea.vmem %s66_s26, 4096  ;;  %p2349_p2 = scmp.lt.s32.totalorder %s66_s26, %s66_s26 }
  0x26   :  { %p2345_p1 = scmp.ne.s32.totalorder %s66_s26, %s2344_s27  ;;  %p2350_p3 = scmp.lt.s32.totalorder %s2344_s27, %s2344_s27 }
  0x28   :  { %p2351_p4 = por %p2350_p3, %p2349_p2 }
  0x2a   :  { %p2352_p5 = pnand %p2351_p4, %p2345_p1 }
  0x2c   :  { %2355 = shalt.err (!%p2352_p5)
}
  0x2d   :  { %s2390_s1 = smov 64   ;;  %s2391_s28 = smov 4  }
  0x2e   :  { %71 = dma.hbm_to_vmem [thread:$0]  %s2517_s7, 4096, %s66_s26, [#allocation9], %s2390_s1, %s2390_s1, %s2391_s28  }
  0x2f   :  { %2376 = dma.done.wait [#allocation3], 512  }
  0x30   :  { %2377 = vsyncadd [#allocation3], 4294966784 }
  0x31   :  { %2378 = dma.done.wait [#allocation6], 20480  }
  0x32   :  { %2379 = vsyncadd [#allocation6], 4294946816 }
  0x33   :  { %2380 = dma.done.wait [#allocation9], 4096  }
  0x34   :  { %2381 = vsyncadd [#allocation9], 4294963200  ;;  %v2392_v0 = vmov 0   ;;  %v2393_v1 = vmov 2   ;;  %v2004_v2 = vld [vmem:[#allocation7 + $0xe4] ss:$16 sps:$4 sm:$0xff]  }
  0x35   :  { %1999 = vset.pattern.permute.xlu0 %v2392_v0  ;;  %2001 = vset.pattern.permute.xlu1 %v2393_v1  ;;  %v2006_v3 = vld [vmem:[#allocation7 + $0x2e4] ss:$16 sps:$4 sm:$0xff]   ;;  %v2008_v4 = vld [vmem:[#allocation7 + $0xe0] ss:$16 sps:$4 sm:$0xff]   ;;  %v2394_v25 = vmov 1   ;;  %v2395_v26 = vmov 3  }
  0x36   :  { %947 = vmatprep.subr.bf16.mxu0 %v2004_v2  ;;  %v2009_v5 = vld [vmem:[#allocation7 + $0x2e0] ss:$16 sps:$4 sm:$0xff]   ;;  %988 = vmatprep.subr.bf16.mxu1 %v2006_v3  ;;  %v2010_v6 = vld [vmem:[#allocation7 + $0xc4] ss:$16 sps:$4 sm:$0xff]   ;;  %v172_v52 = vld [vmem:[#allocation2 + $0x8] sm:$0xff]  ;;  %s2396_s14 = smov [#allocation10]  }
  0x37   :  { %948 = vmatpush1.bf16.msra.mxu0 %v2008_v4  ;;  %989 = vmatpush1.bf16.msra.mxu1 %v2009_v5  ;;  %v2012_v7 = vld [vmem:[#allocation7 + $0x2c4] ss:$16 sps:$4 sm:$0xff]   ;;  %v2014_v8 = vld [vmem:[#allocation7 + $0xc0] ss:$16 sps:$4 sm:$0xff]   ;;  %v174_v53 = vld [vmem:[#allocation2 + $0x18] sm:$0xff]  ;;  %v176_v55 = vpack.c.bf16 %v172_v52, %v172_v52  ;;  %s1737_s15 = sshll.u32 %s2396_s14, 4  ;;  %s1738_s15 = int_to_ptr.vmem [resolvable:$true] %s1737_s15 }
  0x38   :  { %949 = vmatprep.subr.bf16.mxu0 %v2010_v6  ;;  %v2015_v9 = vld [vmem:[#allocation7 + $0x2c0] ss:$16 sps:$4 sm:$0xff]   ;;  %990 = vmatprep.subr.bf16.mxu1 %v2012_v7  ;;  %v2016_v10 = vld [vmem:[#allocation7 + $0xa4] ss:$16 sps:$4 sm:$0xff]   ;;  %v178_v56 = vpack.c.bf16 %v174_v53, %v174_v53  ;;  %v2154_v52 = vld [vmem:[#allocation7 + $0x1c8] ss:$16 sps:$4 sm:$0xff]   ;;  %p2361_p7 = scmp.lt.s32.totalorder %s1738_s15, %s1738_s15 }
  0x39   :  { %v2018_v11 = vld [vmem:[#allocation7 + $0x2a4] ss:$16 sps:$4 sm:$0xff]   ;;  %v2020_v12 = vld [vmem:[#allocation7 + $0xa0] ss:$16 sps:$4 sm:$0xff]   ;;  %979 = vmatprep.mubr.bf16.mxu0 %v176_v55  ;;  %v2157_v53 = vld [vmem:[#allocation7 + $0x3c8] ss:$16 sps:$4 sm:$0xff]  }
  0x3a   :  { %v2021_v13 = vld [vmem:[#allocation7 + $0x2a0] ss:$16 sps:$4 sm:$0xff]   ;;  %v2022_v14 = vld [vmem:[#allocation7 + $0x84] ss:$16 sps:$4 sm:$0xff]   ;;  %1020 = vmatprep.mubr.bf16.mxu1 %v178_v56  ;;  %s2356_s16 = scalar_lea.vmem %s1738_s15, 128 }
  0x3b   :  { %950 = vmatpush1.bf16.msra.mxu0 %v2014_v8  ;;  %991 = vmatpush1.bf16.msra.mxu1 %v2015_v9  ;;  %v2024_v15 = vld [vmem:[#allocation7 + $0x284] ss:$16 sps:$4 sm:$0xff]   ;;  %v2026_v16 = vld [vmem:[#allocation7 + $0x80] ss:$16 sps:$4 sm:$0xff]   ;;  %p2357_p6 = scmp.ne.s32.totalorder %s1738_s15, %s2356_s16  ;;  %p2362_p8 = scmp.lt.s32.totalorder %s2356_s16, %s2356_s16 }
  0x3c   :  { %951 = vmatprep.subr.bf16.mxu0 %v2016_v10  ;;  %992 = vmatprep.subr.bf16.mxu1 %v2018_v11  ;;  %v2027_v17 = vld [vmem:[#allocation7 + $0x280] ss:$16 sps:$4 sm:$0xff]   ;;  %v2028_v19 = vld [vmem:[#allocation7 + $0x64] ss:$16 sps:$4 sm:$0xff]  }
  0x3d   :  { %v87_v18 = vld [vmem:[%s2510_s0] sm:$0xff]  ;;  %v173_v11 = vld [vmem:[#allocation2 + $0x10] sm:$0xff]  ;;  %p2363_p9 = por %p2362_p8, %p2361_p7 }
  0x3e   :  { %v2030_v20 = vld [vmem:[#allocation7 + $0x264] ss:$16 sps:$4 sm:$0xff]   ;;  %92 = vperm.xlu0 %1999, %v87_v18   ;;  %118 = vperm.xlu1 %2001, %v87_v18   ;;  %v2032_v21 = vld [vmem:[#allocation7 + $0x60] ss:$16 sps:$4 sm:$0xff]  }
  0x3f   :  { %952 = vmatpush1.bf16.msra.mxu0 %v2020_v12  ;;  %993 = vmatpush1.bf16.msra.mxu1 %v2021_v13  ;;  %v2033_v22 = vld [vmem:[#allocation7 + $0x260] ss:$16 sps:$4 sm:$0xff]   ;;  %v2034_v23 = vld [vmem:[#allocation7 + $0x44] ss:$16 sps:$4 sm:$0xff]   ;;  %v2102_v12 = vld [vmem:[#allocation7 + $0xec] ss:$16 sps:$4 sm:$0xff]   ;;  %p2364_p10 = pnand %p2363_p9, %p2357_p6 }
  0x40   :  { %953 = vmatprep.subr.bf16.mxu0 %v2022_v14  ;;  %994 = vmatprep.subr.bf16.mxu1 %v2024_v15  ;;  %v2036_v24 = vld [vmem:[#allocation7 + $0x244] ss:$16 sps:$4 sm:$0xff]   ;;  %v2038_v27 = vld [vmem:[#allocation7 + $0x40] ss:$16 sps:$4 sm:$0xff]   ;;  %v2105_v13 = vld [vmem:[#allocation7 + $0x2ec] ss:$16 sps:$4 sm:$0xff]   ;;  %v2465_v15 = vpack.c.bf16 %v173_v11, %v173_v11 }
  0x41   :  { %v2039_v28 = vld [vmem:[#allocation7 + $0x240] ss:$16 sps:$4 sm:$0xff]   ;;  %v2040_v29 = vld [vmem:[#allocation7 + $0x24] ss:$16 sps:$4 sm:$0xff]   ;;  %v2184_v11 = vld [vmem:[#allocation7 + $0x128] ss:$16 sps:$4 sm:$0xff]  }
  0x42   :  { %2000 = vset.pattern.permute.xlu0 %v2394_v25  ;;  %2002 = vset.pattern.permute.xlu1 %v2395_v26  ;;  %v2042_v30 = vld [vmem:[#allocation7 + $0x224] ss:$16 sps:$4 sm:$0xff]   ;;  %v2044_v31 = vld [vmem:[#allocation7 + $0x20] ss:$16 sps:$4 sm:$0xff]   ;;  %v2115_v25 = vld [vmem:[#allocation7 + $0x2a8] ss:$16 sps:$4 sm:$0xff]  }
  0x43   :  { %954 = vmatpush1.bf16.msra.mxu0 %v2026_v16  ;;  %995 = vmatpush1.bf16.msra.mxu1 %v2027_v17  ;;  %v2045_v32 = vld [vmem:[#allocation7 + $0x220] ss:$16 sps:$4 sm:$0xff]   ;;  %v2046_v33 = vld [vmem:[#allocation7 + $0x4] ss:$16 sps:$4 sm:$0xff]   ;;  %v2100_v16 = vld [vmem:[#allocation7 + $0xe8] ss:$16 sps:$4 sm:$0xff]  }
  0x44   :  { %955 = vmatprep.subr.bf16.mxu0 %v2028_v19  ;;  %996 = vmatprep.subr.bf16.mxu1 %v2030_v20  ;;  %v2048_v34 = vld [vmem:[#allocation7 + $0x204] ss:$16 sps:$4 sm:$0xff]   ;;  %v2050_v35 = vld [vmem:[#allocation7] ss:$16 sps:$4 sm:$0xff]   ;;  %v2103_v17 = vld [vmem:[#allocation7 + $0x2e8] ss:$16 sps:$4 sm:$0xff]  }
  0x45   :  { %108 = vperm.xlu0 %2000, %v87_v18   ;;  %128 = vperm.xlu1 %2002, %v87_v18   ;;  %v2051_v36 = vld [vmem:[#allocation7 + $0x200] ss:$16 sps:$4 sm:$0xff]   ;;  %v2052_v37 = vld [vmem:[#allocation7 + $0x1e4] ss:$16 sps:$4 sm:$0xff]   ;;  %v2108_v18 = vld [vmem:[#allocation7 + $0xcc] ss:$16 sps:$4 sm:$0xff]  }
  0x46   :  { %v2054_v38 = vld [vmem:[#allocation7 + $0x3e4] ss:$16 sps:$4 sm:$0xff]   ;;  %v2056_v39 = vld [vmem:[#allocation7 + $0x1e0] ss:$16 sps:$4 sm:$0xff]   ;;  %v2111_v19 = vld [vmem:[#allocation7 + $0x2cc] ss:$16 sps:$4 sm:$0xff]  }
  0x47   :  { %956 = vmatpush1.bf16.msra.mxu0 %v2032_v21  ;;  %997 = vmatpush1.bf16.msra.mxu1 %v2033_v22  ;;  %v2057_v40 = vld [vmem:[#allocation7 + $0x3e0] ss:$16 sps:$4 sm:$0xff]   ;;  %v2058_v41 = vld [vmem:[#allocation7 + $0x1c4] ss:$16 sps:$4 sm:$0xff]   ;;  %v2106_v20 = vld [vmem:[#allocation7 + $0xc8] ss:$16 sps:$4 sm:$0xff]  }
  0x48   :  { %957 = vmatprep.subr.bf16.mxu0 %v2034_v23  ;;  %998 = vmatprep.subr.bf16.mxu1 %v2036_v24  ;;  %v2060_v42 = vld [vmem:[#allocation7 + $0x3c4] ss:$16 sps:$4 sm:$0xff]   ;;  %v2062_v43 = vld [vmem:[#allocation7 + $0x1c0] ss:$16 sps:$4 sm:$0xff]   ;;  %v2109_v21 = vld [vmem:[#allocation7 + $0x2c8] ss:$16 sps:$4 sm:$0xff]  }
  0x49   :  { %2003 = vset.pattern.permute.xlu0 %v2395_v26  ;;  %v2063_v44 = vld [vmem:[#allocation7 + $0x3c0] ss:$16 sps:$4 sm:$0xff]   ;;  %v2064_v45 = vld [vmem:[#allocation7 + $0x1a4] ss:$16 sps:$4 sm:$0xff]   ;;  %v2114_v22 = vld [vmem:[#allocation7 + $0xac] ss:$16 sps:$4 sm:$0xff]  }
  0x4a   :  { %v2066_v46 = vld [vmem:[#allocation7 + $0x3a4] ss:$16 sps:$4 sm:$0xff]   ;;  %v2068_v47 = vld [vmem:[#allocation7 + $0x1a0] ss:$16 sps:$4 sm:$0xff]   ;;  %v2117_v23 = vld [vmem:[#allocation7 + $0x2ac] ss:$16 sps:$4 sm:$0xff]  }
  0x4b   :  { %958 = vmatpush1.bf16.msra.mxu0 %v2038_v27  ;;  %999 = vmatpush1.bf16.msra.mxu1 %v2039_v28  ;;  %v2069_v48 = vld [vmem:[#allocation7 + $0x3a0] ss:$16 sps:$4 sm:$0xff]   ;;  %v2070_v49 = vld [vmem:[#allocation7 + $0x184] ss:$16 sps:$4 sm:$0xff]   ;;  %v2112_v24 = vld [vmem:[#allocation7 + $0xa8] ss:$16 sps:$4 sm:$0xff]  }
  0x4c   :  { %959 = vmatprep.subr.bf16.mxu0 %v2040_v29  ;;  %1000 = vmatprep.subr.bf16.mxu1 %v2042_v30  ;;  %v2072_v50 = vld [vmem:[#allocation7 + $0x384] ss:$16 sps:$4 sm:$0xff]   ;;  %v2074_v51 = vld [vmem:[#allocation7 + $0x180] ss:$16 sps:$4 sm:$0xff]   ;;  %v2120_v26 = vld [vmem:[#allocation7 + $0x8c] ss:$16 sps:$4 sm:$0xff]  }
  0x4d   :  { %v2075_v54 = vld [vmem:[#allocation7 + $0x380] ss:$16 sps:$4 sm:$0xff]   ;;  %v2076_v57 = vld [vmem:[#allocation7 + $0x164] ss:$16 sps:$4 sm:$0xff]   ;;  %v2123_v27 = vld [vmem:[#allocation7 + $0x28c] ss:$16 sps:$4 sm:$0xff]  }
  0x4e   :  { %v2078_v58 = vld [vmem:[#allocation7 + $0x364] ss:$16 sps:$4 sm:$0xff]   ;;  %v2080_v59 = vld [vmem:[#allocation7 + $0x160] ss:$16 sps:$4 sm:$0xff]   ;;  %v2118_v28 = vld [vmem:[#allocation7 + $0x88] ss:$16 sps:$4 sm:$0xff]  }
  0x4f   :  { %960 = vmatpush1.bf16.msra.mxu0 %v2044_v31  ;;  %1001 = vmatpush1.bf16.msra.mxu1 %v2045_v32  ;;  %v2081_v60 = vld [vmem:[#allocation7 + $0x360] ss:$16 sps:$4 sm:$0xff]   ;;  %v2082_v61 = vld [vmem:[#allocation7 + $0x144] ss:$16 sps:$4 sm:$0xff]   ;;  %v2121_v29 = vld [vmem:[#allocation7 + $0x288] ss:$16 sps:$4 sm:$0xff]  }
  0x50   :  { %961 = vmatprep.subr.bf16.mxu0 %v2046_v33  ;;  %1002 = vmatprep.subr.bf16.mxu1 %v2048_v34  ;;  %v2084_v62 = vld [vmem:[#allocation7 + $0x344] ss:$16 sps:$4 sm:$0xff]   ;;  %v2086_v63 = vld [vmem:[#allocation7 + $0x140] ss:$16 sps:$4 sm:$0xff]   ;;  %v2126_v30 = vld [vmem:[#allocation7 + $0x6c] ss:$16 sps:$4 sm:$0xff]  }
  0x51   :  { %v2087_v1 = vld [vmem:[#allocation7 + $0x340] ss:$16 sps:$4 sm:$0xff]   ;;  %v2088_v2 = vld [vmem:[#allocation7 + $0x124] ss:$16 sps:$4 sm:$0xff]   ;;  %v2129_v31 = vld [vmem:[#allocation7 + $0x26c] ss:$16 sps:$4 sm:$0xff]  }
  0x52   :  { %v2090_v3 = vld [vmem:[#allocation7 + $0x324] ss:$16 sps:$4 sm:$0xff]   ;;  %v2092_v4 = vld [vmem:[#allocation7 + $0x120] ss:$16 sps:$4 sm:$0xff]   ;;  %v2124_v32 = vld [vmem:[#allocation7 + $0x68] ss:$16 sps:$4 sm:$0xff]  }
  0x53   :  { %962 = vmatpush1.bf16.msra.mxu0 %v2050_v35  ;;  %1003 = vmatpush1.bf16.msra.mxu1 %v2051_v36  ;;  %v2093_v5 = vld [vmem:[#allocation7 + $0x320] ss:$16 sps:$4 sm:$0xff]   ;;  %v2094_v6 = vld [vmem:[#allocation7 + $0x104] ss:$16 sps:$4 sm:$0xff]   ;;  %v2127_v33 = vld [vmem:[#allocation7 + $0x268] ss:$16 sps:$4 sm:$0xff]  }
  0x54   :  { %963 = vmatprep.subr.bf16.mxu0 %v2052_v37  ;;  %1004 = vmatprep.subr.bf16.mxu1 %v2054_v38  ;;  %v2096_v7 = vld [vmem:[#allocation7 + $0x304] ss:$16 sps:$4 sm:$0xff]   ;;  %v2098_v8 = vld [vmem:[#allocation7 + $0x100] ss:$16 sps:$4 sm:$0xff]   ;;  %v2132_v34 = vld [vmem:[#allocation7 + $0x4c] ss:$16 sps:$4 sm:$0xff]  }
  0x55   :  { %v2099_v9 = vld [vmem:[#allocation7 + $0x300] ss:$16 sps:$4 sm:$0xff]   ;;  %v2135_v35 = vld [vmem:[#allocation7 + $0x24c] ss:$16 sps:$4 sm:$0xff]   ;;  %v2130_v36 = vld [vmem:[#allocation7 + $0x48] ss:$16 sps:$4 sm:$0xff]  }
  0x56   :  { %v171_v10 = vld [vmem:[#allocation2] sm:$0xff]  ;;  %v2133_v37 = vld [vmem:[#allocation7 + $0x248] ss:$16 sps:$4 sm:$0xff]   ;;  %v2138_v38 = vld [vmem:[#allocation7 + $0x2c] ss:$16 sps:$4 sm:$0xff]  }
  0x57   :  { %964 = vmatpush2.bf16.msra.mxu0 %v2056_v39  ;;  %1005 = vmatpush2.bf16.msra.mxu1 %v2057_v40  ;;  %v2463_v14 = vpack.c.bf16 %v171_v10, %v171_v10  ;;  %v2141_v39 = vld [vmem:[#allocation7 + $0x22c] ss:$16 sps:$4 sm:$0xff]   ;;  %v2136_v40 = vld [vmem:[#allocation7 + $0x28] ss:$16 sps:$4 sm:$0xff]  }
  0x58   :  { %965 = vmatprep.subr.bf16.mxu0 %v2058_v41  ;;  %1006 = vmatprep.subr.bf16.mxu1 %v2060_v42  ;;  %v2139_v41 = vld [vmem:[#allocation7 + $0x228] ss:$16 sps:$4 sm:$0xff]   ;;  %v2144_v42 = vld [vmem:[#allocation7 + $0xc] ss:$16 sps:$4 sm:$0xff]  }
  0x59   :  { %v2189_v10 = vld [vmem:[#allocation7 + $0x32c] ss:$16 sps:$4 sm:$0xff]  }
  0x5b   :  { %966 = vmatpush2.bf16.msra.mxu0 %v2062_v43  ;;  %1007 = vmatpush2.bf16.msra.mxu1 %v2063_v44  ;;  %v2147_v43 = vld [vmem:[#allocation7 + $0x20c] ss:$16 sps:$4 sm:$0xff]   ;;  %v2142_v44 = vld [vmem:[#allocation7 + $0x8] ss:$16 sps:$4 sm:$0xff]  }
  0x5c   :  { %967 = vmatprep.subr.bf16.mxu0 %v2064_v45  ;;  %1008 = vmatprep.subr.bf16.mxu1 %v2066_v46  ;;  %v2145_v45 = vld [vmem:[#allocation7 + $0x208] ss:$16 sps:$4 sm:$0xff]   ;;  %v2150_v46 = vld [vmem:[#allocation7 + $0x1ec] ss:$16 sps:$4 sm:$0xff]  }
  0x5f   :  { %968 = vmatpush2.bf16.msra.mxu0 %v2068_v47  ;;  %1009 = vmatpush2.bf16.msra.mxu1 %v2069_v48  ;;  %v2153_v47 = vld [vmem:[#allocation7 + $0x3ec] ss:$16 sps:$4 sm:$0xff]   ;;  %v2148_v48 = vld [vmem:[#allocation7 + $0x1e8] ss:$16 sps:$4 sm:$0xff]  }
  0x60   :  { %969 = vmatprep.subr.bf16.mxu0 %v2070_v49  ;;  %1010 = vmatprep.subr.bf16.mxu1 %v2072_v50  ;;  %v2151_v49 = vld [vmem:[#allocation7 + $0x3e8] ss:$16 sps:$4 sm:$0xff]   ;;  %v2156_v50 = vld [vmem:[#allocation7 + $0x1cc] ss:$16 sps:$4 sm:$0xff]  }
  0x63   :  { %970 = vmatpush2.bf16.msra.mxu0 %v2074_v51  ;;  %1011 = vmatpush2.bf16.msra.mxu1 %v2075_v54  ;;  %v2159_v51 = vld [vmem:[#allocation7 + $0x3cc] ss:$16 sps:$4 sm:$0xff]  }
  0x64   :  { %971 = vmatprep.subr.bf16.mxu0 %v2076_v57  ;;  %1012 = vmatprep.subr.bf16.mxu1 %v2078_v58  ;;  %v2162_v54 = vld [vmem:[#allocation7 + $0x1ac] ss:$16 sps:$4 sm:$0xff]   ;;  %v2163_v57 = vld [vmem:[#allocation7 + $0x3a8] ss:$16 sps:$4 sm:$0xff]  }
  0x65   :  { %v2168_v58 = vld [vmem:[#allocation7 + $0x18c] ss:$16 sps:$4 sm:$0xff]  }
  0x67   :  { %972 = vmatpush2.bf16.msra.mxu0 %v2080_v59  ;;  %1013 = vmatpush2.bf16.msra.mxu1 %v2081_v60  ;;  %v95_v59 = vlaneseq  ;;  %v2171_v60 = vld [vmem:[#allocation7 + $0x38c] ss:$16 sps:$4 sm:$0xff]  }
  0x68   :  { %973 = vmatprep.subr.bf16.mxu0 %v2082_v61  ;;  %1014 = vmatprep.subr.bf16.mxu1 %v2084_v62  ;;  %v2166_v61 = vld [vmem:[#allocation7 + $0x188] ss:$16 sps:$4 sm:$0xff]  }
  0x69   :  { %v2169_v62 = vld [vmem:[#allocation7 + $0x388] ss:$16 sps:$4 sm:$0xff]  }
  0x6b   :  { %974 = vmatpush2.bf16.msra.mxu0 %v2086_v63  ;;  %1015 = vmatpush2.bf16.msra.mxu1 %v2087_v1  ;;  %v2174_v63 = vld [vmem:[#allocation7 + $0x16c] ss:$16 sps:$4 sm:$0xff]  }
  0x6c   :  { %975 = vmatprep.subr.bf16.mxu0 %v2088_v2  ;;  %1016 = vmatprep.subr.bf16.mxu1 %v2090_v3  ;;  %v2177_v1 = vld [vmem:[#allocation7 + $0x36c] ss:$16 sps:$4 sm:$0xff]   ;;  %v2469_v2 = vshrl.u32 %v95_v59, 7  ;;  %v2172_v3 = vld [vmem:[#allocation7 + $0x168] ss:$16 sps:$4 sm:$0xff]  }
  0x6f   :  { %976 = vmatpush2.bf16.msra.mxu0 %v2092_v4  ;;  %1017 = vmatpush2.bf16.msra.mxu1 %v2093_v5  ;;  %v2175_v4 = vld [vmem:[#allocation7 + $0x368] ss:$16 sps:$4 sm:$0xff]   ;;  %v2180_v5 = vld [vmem:[#allocation7 + $0x14c] ss:$16 sps:$4 sm:$0xff]  }
  0x70   :  { %977 = vmatprep.subr.bf16.mxu0 %v2094_v6  ;;  %1018 = vmatprep.subr.bf16.mxu1 %v2096_v7  ;;  %v2183_v6 = vld [vmem:[#allocation7 + $0x34c] ss:$16 sps:$4 sm:$0xff]   ;;  %v2178_v7 = vld [vmem:[#allocation7 + $0x148] ss:$16 sps:$4 sm:$0xff]  }
  0x73   :  { %978 = vmatpush2.bf16.msra.mxu0 %v2098_v8  ;;  %1019 = vmatpush2.bf16.msra.mxu1 %v2099_v9  ;;  %v2181_v8 = vld [vmem:[#allocation7 + $0x348] ss:$16 sps:$4 sm:$0xff]   ;;  %v2186_v9 = vld [vmem:[#allocation7 + $0x12c] ss:$16 sps:$4 sm:$0xff]  }
  0x74   :  { %1029 = vmatprep.subr.bf16.mxu0 %v2102_v12  ;;  %1070 = vmatprep.subr.bf16.mxu1 %v2105_v13  ;;  %v2187_v12 = vld [vmem:[#allocation7 + $0x328] ss:$16 sps:$4 sm:$0xff]   ;;  %v2192_v13 = vld [vmem:[#allocation7 + $0x10c] ss:$16 sps:$4 sm:$0xff]  }
  0x76   :  { %980 = vmatmul.mubr.bf16.vlgmr.msra.gmra.mxu0 %v2463_v14  ;;  %1021 = vmatmul.mubr.bf16.vlgmr.msra.gmra.mxu1 %v2465_v15 }
  0x77   :  { %1030 = vmatpush1.bf16.msra.mxu0 %v2100_v16  ;;  %1071 = vmatpush1.bf16.msra.mxu1 %v2103_v17  ;;  %v2195_v16 = vld [vmem:[#allocation7 + $0x30c] ss:$16 sps:$4 sm:$0xff]   ;;  %v2190_v17 = vld [vmem:[#allocation7 + $0x108] ss:$16 sps:$4 sm:$0xff]  }
  0x78   :  { %1031 = vmatprep.subr.bf16.mxu0 %v2108_v18  ;;  %1072 = vmatprep.subr.bf16.mxu1 %v2111_v19  ;;  %v2193_v18 = vld [vmem:[#allocation7 + $0x308] ss:$16 sps:$4 sm:$0xff]   ;;  %v2198_v19 = vld [vmem:[#allocation5 + $0xe4] ss:$16 sps:$4 sm:$0xff]  }
  0x79   :  { %1061 = vmatprep.mubr.bf16.mxu0 %v176_v55  ;;  %1102 = vmatprep.mubr.bf16.mxu1 %v178_v56  ;;  %v2165_v55 = vld [vmem:[#allocation7 + $0x3ac] ss:$16 sps:$4 sm:$0xff]   ;;  %v2160_v56 = vld [vmem:[#allocation7 + $0x1a8] ss:$16 sps:$4 sm:$0xff]  }
  0x7b   :  { %1032 = vmatpush1.bf16.msra.mxu0 %v2106_v20  ;;  %1073 = vmatpush1.bf16.msra.mxu1 %v2109_v21  ;;  %v2201_v20 = vld [vmem:[#allocation5 + $0xec] ss:$16 sps:$4 sm:$0xff]   ;;  %v2196_v21 = vld [vmem:[#allocation5 + $0xe0] ss:$16 sps:$4 sm:$0xff]  }
  0x7c   :  { %1033 = vmatprep.subr.bf16.mxu0 %v2114_v22  ;;  %1074 = vmatprep.subr.bf16.mxu1 %v2117_v23  ;;  %v2199_v22 = vld [vmem:[#allocation5 + $0xe8] ss:$16 sps:$4 sm:$0xff]   ;;  %v2204_v23 = vld [vmem:[#allocation5 + $0xc4] ss:$16 sps:$4 sm:$0xff]  }
  0x7f   :  { %1034 = vmatpush1.bf16.msra.mxu0 %v2112_v24  ;;  %1075 = vmatpush1.bf16.msra.mxu1 %v2115_v25  ;;  %v2207_v24 = vld [vmem:[#allocation5 + $0xcc] ss:$16 sps:$4 sm:$0xff]   ;;  %v97_v25 = vsub.s32 0, %v2469_v2 }
  0x80   :  { %1035 = vmatprep.subr.bf16.mxu0 %v2120_v26  ;;  %1076 = vmatprep.subr.bf16.mxu1 %v2123_v27  ;;  %v88_v26 = vld [vmem:[%s2512_s2] sm:$0xf] }
  0x81   :  { %v2202_v27 = vld [vmem:[#allocation5 + $0xc0] ss:$16 sps:$4 sm:$0xff]  }
  0x83   :  { %1036 = vmatpush1.bf16.msra.mxu0 %v2118_v28  ;;  %1077 = vmatpush1.bf16.msra.mxu1 %v2121_v29  ;;  %v2205_v28 = vld [vmem:[#allocation5 + $0xc8] ss:$16 sps:$4 sm:$0xff]   ;;  %v2210_v29 = vld [vmem:[#allocation5 + $0xa4] ss:$16 sps:$4 sm:$0xff]  }
  0x84   :  { %1037 = vmatprep.subr.bf16.mxu0 %v2126_v30  ;;  %1078 = vmatprep.subr.bf16.mxu1 %v2129_v31  ;;  %v2213_v30 = vld [vmem:[#allocation5 + $0xac] ss:$16 sps:$4 sm:$0xff]   ;;  %v98_v31 = vrot.slane %v88_v26, %v97_v25 }
  0x87   :  { %1038 = vmatpush1.bf16.msra.mxu0 %v2124_v32  ;;  %1079 = vmatpush1.bf16.msra.mxu1 %v2127_v33  ;;  %v2211_v32 = vld [vmem:[#allocation5 + $0xa8] ss:$16 sps:$4 sm:$0xff]   ;;  %v2216_v33 = vld [vmem:[#allocation5 + $0x84] ss:$16 sps:$4 sm:$0xff]  }
  0x88   :  { %1039 = vmatprep.subr.bf16.mxu0 %v2132_v34  ;;  %1080 = vmatprep.subr.bf16.mxu1 %v2135_v35  ;;  %v2219_v34 = vld [vmem:[#allocation5 + $0x8c] ss:$16 sps:$4 sm:$0xff]  }
  0x8b   :  { %1040 = vmatpush1.bf16.msra.mxu0 %v2130_v36  ;;  %1081 = vmatpush1.bf16.msra.mxu1 %v2133_v37  ;;  %v123_v36 = vsub.s32 2, %v2469_v2  ;;  %v1748_v37 = vld [vmem:[%s2513_s3] ss:$0 sm:$0xff] }
  0x8c   :  { %1041 = vmatprep.subr.bf16.mxu0 %v2138_v38  ;;  %1082 = vmatprep.subr.bf16.mxu1 %v2141_v39  ;;  %v2214_v39 = vld [vmem:[#allocation5 + $0x80] ss:$16 sps:$4 sm:$0xff]  }
  0x8f   :  { %1042 = vmatpush1.bf16.msra.mxu0 %v2136_v40  ;;  %1083 = vmatpush1.bf16.msra.mxu1 %v2139_v41  ;;  %v2217_v40 = vld [vmem:[#allocation5 + $0x88] ss:$16 sps:$4 sm:$0xff]  }
  0x90   :  { %1043 = vmatprep.subr.bf16.mxu0 %v2144_v42  ;;  %1084 = vmatprep.subr.bf16.mxu1 %v2147_v43  ;;  %v2222_v43 = vld [vmem:[#allocation5 + $0x64] ss:$16 sps:$4 sm:$0xff]  }
  0x93   :  { %1044 = vmatpush1.bf16.msra.mxu0 %v2142_v44  ;;  %1085 = vmatpush1.bf16.msra.mxu1 %v2145_v45  ;;  %v2225_v44 = vld [vmem:[#allocation5 + $0x6c] ss:$16 sps:$4 sm:$0xff]   ;;  %v124_v45 = vrot.slane %v88_v26, %v123_v36 }
  0x94   :  { %1045 = vmatprep.subr.bf16.mxu0 %v2150_v46  ;;  %1086 = vmatprep.subr.bf16.mxu1 %v2153_v47  ;;  %v133_v46 = vsub.s32 3, %v2469_v2 }
  0x97   :  { %1046 = vmatpush2.bf16.msra.mxu0 %v2148_v48  ;;  %1087 = vmatpush2.bf16.msra.mxu1 %v2151_v49  ;;  %v2220_v49 = vld [vmem:[#allocation5 + $0x60] ss:$16 sps:$4 sm:$0xff]  }
  0x98   :  { %1047 = vmatprep.subr.bf16.mxu0 %v2156_v50  ;;  %1088 = vmatprep.subr.bf16.mxu1 %v2159_v51  ;;  %v2223_v50 = vld [vmem:[#allocation5 + $0x68] ss:$16 sps:$4 sm:$0xff]  }
  0x9b   :  { %1048 = vmatpush2.bf16.msra.mxu0 %v2154_v52  ;;  %1089 = vmatpush2.bf16.msra.mxu1 %v2157_v53  ;;  %v2228_v53 = vld [vmem:[#allocation5 + $0x44] ss:$16 sps:$4 sm:$0xff]  }
  0x9c   :  { %1049 = vmatprep.subr.bf16.mxu0 %v2162_v54  ;;  %1090 = vmatprep.subr.bf16.mxu1 %v2165_v55  ;;  %v2231_v54 = vld [vmem:[#allocation5 + $0x4c] ss:$16 sps:$4 sm:$0xff]   ;;  %v134_v55 = vrot.slane %v88_v26, %v133_v46 }
  0x9f   :  { %1050 = vmatpush2.bf16.msra.mxu0 %v2160_v56  ;;  %1091 = vmatpush2.bf16.msra.mxu1 %v2163_v57  ;;  %v2226_v57 = vld [vmem:[#allocation5 + $0x40] ss:$16 sps:$4 sm:$0xff]  }
  0xa0   :  { %1051 = vmatprep.subr.bf16.mxu0 %v2168_v58  ;;  %1092 = vmatprep.subr.bf16.mxu1 %v2171_v60  ;;  %v2229_v58 = vld [vmem:[#allocation5 + $0x48] ss:$16 sps:$4 sm:$0xff]  }
  0xa3   :  { %1052 = vmatpush2.bf16.msra.mxu0 %v2166_v61  ;;  %1093 = vmatpush2.bf16.msra.mxu1 %v2169_v62  ;;  %v2234_v61 = vld [vmem:[#allocation5 + $0x24] ss:$16 sps:$4 sm:$0xff]   ;;  %v2237_v62 = vld [vmem:[#allocation5 + $0x2c] ss:$16 sps:$4 sm:$0xff]  }
  0xa4   :  { %1053 = vmatprep.subr.bf16.mxu0 %v2174_v63  ;;  %1094 = vmatprep.subr.bf16.mxu1 %v2177_v1  ;;  %v2232_v63 = vld [vmem:[#allocation5 + $0x20] ss:$16 sps:$4 sm:$0xff]   ;;  %v2235_v1 = vld [vmem:[#allocation5 + $0x28] ss:$16 sps:$4 sm:$0xff]  }
  0xa7   :  { %1054 = vmatpush2.bf16.msra.mxu0 %v2172_v3  ;;  %1095 = vmatpush2.bf16.msra.mxu1 %v2175_v4  ;;  %v2240_v4 = vld [vmem:[#allocation5 + $0x4] ss:$16 sps:$4 sm:$0xff]  }
  0xa8   :  { %1055 = vmatprep.subr.bf16.mxu0 %v2180_v5  ;;  %1096 = vmatprep.subr.bf16.mxu1 %v2183_v6  ;;  %v2243_v5 = vld [vmem:[#allocation5 + $0xc] ss:$16 sps:$4 sm:$0xff]   ;;  %v2238_v6 = vld [vmem:[#allocation5] ss:$16 sps:$4 sm:$0xff]  }
  0xab   :  { %1056 = vmatpush2.bf16.msra.mxu0 %v2178_v7  ;;  %1097 = vmatpush2.bf16.msra.mxu1 %v2181_v8  ;;  %v2241_v7 = vld [vmem:[#allocation5 + $0x8] ss:$16 sps:$4 sm:$0xff]  }
  0xac   :  { %1057 = vmatprep.subr.bf16.mxu0 %v2186_v9  ;;  %1098 = vmatprep.subr.bf16.mxu1 %v2189_v10  ;;  %v2244_v10 = vld [vmem:[#allocation8 + $0x78] sm:$0xff]  }
  0xaf   :  { %1058 = vmatpush2.bf16.msra.mxu0 %v2184_v11  ;;  %1099 = vmatpush2.bf16.msra.mxu1 %v2187_v12  ;;  %v2245_v11 = vld [vmem:[#allocation8 + $0xf8] sm:$0xff]  }
  0xb0   :  { %1059 = vmatprep.subr.bf16.mxu0 %v2192_v13  ;;  %1100 = vmatprep.subr.bf16.mxu1 %v2195_v16  ;;  %v2246_v12 = vld [vmem:[#allocation8 + $0x38] sm:$0xff]   ;;  %v2248_v16 = vld [vmem:[#allocation8 + $0x70] sm:$0xff]  }
  0xb1   :  { %v2247_v13 = vld [vmem:[#allocation8 + $0xb8] sm:$0xff]  }
  0xb3   :  { %1060 = vmatpush2.bf16.msra.mxu0 %v2190_v17  ;;  %1101 = vmatpush2.bf16.msra.mxu1 %v2193_v18  ;;  %v2249_v17 = vld [vmem:[#allocation8 + $0xf0] sm:$0xff]  }
  0xb4   :  { %1271 = vmatprep.subr.bf16.mxu0 %v2198_v19  ;;  %1312 = vmatprep.subr.bf16.mxu1 %v2201_v20  ;;  %v2250_v18 = vld [vmem:[#allocation8 + $0x30] sm:$0xff]   ;;  %v2252_v20 = vld [vmem:[#allocation8 + $0x68] sm:$0xff]  }
  0xb5   :  { %v2251_v19 = vld [vmem:[#allocation8 + $0xb0] sm:$0xff]  }
  0xb6   :  { %1062 = vmatmul.mubr.bf16.vlgmr.msra.gmra.mxu0 %v2463_v14  ;;  %1103 = vmatmul.mubr.bf16.vlgmr.msra.gmra.mxu1 %v2465_v15  ;;  %v113_v14 = vsub.s32 1, %v2469_v2  ;;  %v2208_v15 = vld [vmem:[#allocation5 + $0xa0] ss:$16 sps:$4 sm:$0xff]  }
  0xb7   :  { %1272 = vmatpush1.bf16.msra.mxu0 %v2196_v21  ;;  %1313 = vmatpush1.bf16.msra.mxu1 %v2199_v22  ;;  %v2253_v21 = vld [vmem:[#allocation8 + $0xe8] sm:$0xff]  }
  0xb8   :  { %1273 = vmatprep.subr.bf16.mxu0 %v2204_v23  ;;  %1314 = vmatprep.subr.bf16.mxu1 %v2207_v24  ;;  %v2254_v22 = vld [vmem:[#allocation8 + $0x28] sm:$0xff]   ;;  %v2256_v24 = vld [vmem:[#allocation8 + $0x60] sm:$0xff]  }
  0xb9   :  { %1303 = vmatprep.mubr.bf16.mxu0 %v2392_v0  ;;  %1344 = vmatprep.mubr.bf16.mxu1 %v2392_v0  ;;  %v93_v35 = vpop.permute.xlu0 %92  ;;  %v114_v0 = vrot.slane %v88_v26, %v113_v14  ;;  %v119_v41 = vpop.permute.xlu1 %118  ;;  %v2255_v23 = vld [vmem:[#allocation8 + $0xa8] sm:$0xff]   ;;  %v2257_v26 = vld [vmem:[#allocation8 + $0xe0] sm:$0xff]  }
  0xba   :  { %v99_v38 = vmul.f32 %v98_v31, %v93_v35  ;;  %v125_v51 = vmul.f32 %v124_v45, %v119_v41  ;;  %v2262_v31 = vld [vmem:[#allocation8 + $0x18] sm:$0xff]   ;;  %v2267_v35 = vld [vmem:[#allocation8 + $0x90] sm:$0xff]   ;;  %v2273_v41 = vld [vmem:[#allocation8 + $0xc0] sm:$0xff]  }
  0xbb   :  { %1274 = vmatpush1.bf16.msra.mxu0 %v2202_v27  ;;  %1315 = vmatpush1.bf16.msra.mxu1 %v2205_v28  ;;  %v2258_v27 = vld [vmem:[#allocation8 + $0x20] sm:$0xff]  }
  0xbc   :  { %1275 = vmatprep.subr.bf16.mxu0 %v2210_v29  ;;  %1316 = vmatprep.subr.bf16.mxu1 %v2213_v30  ;;  %v106_v42 = vadd.f32 %v1748_v37, %v99_v38  ;;  %v2259_v28 = vld [vmem:[#allocation8 + $0xa0] sm:$0xff]   ;;  %v2260_v29 = vld [vmem:[#allocation8 + $0x58] sm:$0xff]   ;;  %v2268_v37 = vld [vmem:[#allocation8 + $0x48] sm:$0xff]  }
  0xbd   :  { %v2261_v30 = vld [vmem:[#allocation8 + $0xd8] sm:$0xff]   ;;  %v2269_v38 = vld [vmem:[#allocation8 + $0xc8] sm:$0xff]  }
  0xbf   :  { %1276 = vmatpush1.bf16.msra.mxu0 %v2208_v15  ;;  %1317 = vmatpush1.bf16.msra.mxu1 %v2211_v32  ;;  %v2263_v15 = vld [vmem:[#allocation8 + $0x98] sm:$0xff]   ;;  %v2264_v32 = vld [vmem:[#allocation8 + $0x50] sm:$0xff]  }
  0xc0   :  { %1277 = vmatprep.subr.bf16.mxu0 %v2216_v33  ;;  %1318 = vmatprep.subr.bf16.mxu1 %v2219_v34  ;;  %v109_v47 = vpop.permute.xlu0 %108  ;;  %v129_v56 = vpop.permute.xlu1 %128  ;;  %v2265_v33 = vld [vmem:[#allocation8 + $0xd0] sm:$0xff]  }
  0xc1   :  { %v115_v48 = vmul.f32 %v114_v0, %v109_v47  ;;  %v135_v60 = vmul.f32 %v134_v55, %v129_v56  ;;  %v2266_v34 = vld [vmem:[#allocation8 + $0x10] sm:$0xff]   ;;  %v2270_v0 = vld [vmem:[#allocation8 + $0x8] sm:$0xff]  }
  0xc3   :  { %1278 = vmatpush1.bf16.msra.mxu0 %v2214_v39  ;;  %1319 = vmatpush1.bf16.msra.mxu1 %v2217_v40  ;;  %v116_v52 = vadd.f32 %v115_v48, %v106_v42  ;;  %v2271_v39 = vld [vmem:[#allocation8 + $0x88] sm:$0xff]   ;;  %v2272_v40 = vld [vmem:[#allocation8 + $0x40] sm:$0xff]  }
  0xc4   :  { %1279 = vmatprep.subr.bf16.mxu0 %v2222_v43  ;;  %1320 = vmatprep.subr.bf16.mxu1 %v2225_v44  ;;  %v2274_v42 = vld [vmem:[#allocation8] sm:$0xff]  }
  0xc5   :  { %v126_v59 = vadd.f32 %v125_v51, %v116_v52  ;;  %v2275_v43 = vld [vmem:[#allocation8 + $0x80] sm:$0xff]  }
  0xc7   :  { %1280 = vmatpush1.bf16.msra.mxu0 %v2220_v49  ;;  %1321 = vmatpush1.bf16.msra.mxu1 %v2223_v50  ;;  %v136_v3 = vadd.f32 %v135_v60, %v126_v59 }
  0xc8   :  { %1281 = vmatprep.subr.bf16.mxu0 %v2228_v53  ;;  %1322 = vmatprep.subr.bf16.mxu1 %v2231_v54 }
  0xc9   :  { %v137_v8 = vmax.f32 %v136_v3, 0.0 }
  0xcb   :  { %1282 = vmatpush1.bf16.msra.mxu0 %v2226_v57  ;;  %1323 = vmatpush1.bf16.msra.mxu1 %v2229_v58  ;;  %v138_v9 = vpack.c.bf16 %v137_v8, %v137_v8 }
  0xcc   :  { %1283 = vmatprep.subr.bf16.mxu0 %v2234_v61  ;;  %1324 = vmatprep.subr.bf16.mxu1 %v2237_v62 }
  0xcf   :  { %1284 = vmatpush1.bf16.msra.mxu0 %v2232_v63  ;;  %1325 = vmatpush1.bf16.msra.mxu1 %v2235_v1  ;;  %v1353_v63 = vld [vmem:[%s2516_s6] sm:$0xf] }
  0xd0   :  { %1285 = vmatprep.subr.bf16.mxu0 %v2240_v4  ;;  %1326 = vmatprep.subr.bf16.mxu1 %v2243_v5  ;;  %v1358_v3 = vrot.slane %v1353_v63, %v97_v25  ;;  %v1366_v4 = vrot.slane %v1353_v63, %v123_v36 }
  0xd3   :  { %1286 = vmatpush1.bf16.msra.mxu0 %v2238_v6  ;;  %1327 = vmatpush1.bf16.msra.mxu1 %v2241_v7  ;;  %v1362_v7 = vrot.slane %v1353_v63, %v113_v14 }
  0xd4   :  { %1942 = vmatprep.subr.bf16.mxu0 %v2244_v10  ;;  %1964 = vmatprep.subr.bf16.mxu1 %v2245_v11  ;;  %v1370_v11 = vrot.slane %v1353_v63, %v133_v46 }
  0xd6   :  { %1304 = vmatmul.mubr.bf16.vlgmr.msra.gmra.mxu0 %v138_v9  ;;  %1345 = vmatmul.mubr.bf16.vlgmr.msra.gmra.mxu1 %v138_v9 }
  0xd7   :  { %1943 = vmatpush3.bf16.msra.mxu0 %v2246_v12  ;;  %1965 = vmatpush3.bf16.msra.mxu1 %v2247_v13 }
  0xd8   :  { %1944 = vmatprep.subr.bf16.mxu0 %v2248_v16  ;;  %1966 = vmatprep.subr.bf16.mxu1 %v2249_v17 }
  0xdb   :  { %1945 = vmatpush3.bf16.msra.mxu0 %v2250_v18  ;;  %1967 = vmatpush3.bf16.msra.mxu1 %v2251_v19 }
  0xdc   :  { %1946 = vmatprep.subr.bf16.mxu0 %v2252_v20  ;;  %1968 = vmatprep.subr.bf16.mxu1 %v2253_v21 }
  0xdf   :  { %1947 = vmatpush3.bf16.msra.mxu0 %v2254_v22  ;;  %1969 = vmatpush3.bf16.msra.mxu1 %v2255_v23 }
  0xe0   :  { %1948 = vmatprep.subr.bf16.mxu0 %v2256_v24  ;;  %1970 = vmatprep.subr.bf16.mxu1 %v2257_v26 }
  0xe3   :  { %1949 = vmatpush3.bf16.msra.mxu0 %v2258_v27  ;;  %1971 = vmatpush3.bf16.msra.mxu1 %v2259_v28 }
  0xe4   :  { %1950 = vmatprep.subr.bf16.mxu0 %v2260_v29  ;;  %1972 = vmatprep.subr.bf16.mxu1 %v2261_v30 }
  0xe7   :  { %1951 = vmatpush3.bf16.msra.mxu0 %v2262_v31  ;;  %1973 = vmatpush3.bf16.msra.mxu1 %v2263_v15  ;;  %v1909_v15 = vld [vmem:[%s2518_s8] ss:$0 sm:$0xff] }
  0xe8   :  { %1952 = vmatprep.subr.bf16.mxu0 %v2264_v32  ;;  %1974 = vmatprep.subr.bf16.mxu1 %v2265_v33 }
  0xeb   :  { %1953 = vmatpush3.bf16.msra.mxu0 %v2266_v34  ;;  %1975 = vmatpush3.bf16.msra.mxu1 %v2267_v35 }
  0xec   :  { %1954 = vmatprep.subr.bf16.mxu0 %v2268_v37  ;;  %1976 = vmatprep.subr.bf16.mxu1 %v2269_v38 }
  0xef   :  { %1955 = vmatpush3.bf16.msra.mxu0 %v2270_v0  ;;  %1977 = vmatpush3.bf16.msra.mxu1 %v2271_v39 }
  0xf0   :  { %1956 = vmatprep.subr.bf16.mxu0 %v2272_v40  ;;  %1978 = vmatprep.subr.bf16.mxu1 %v2273_v41 }
  0xf3   :  { %1957 = vmatpush3.bf16.msra.mxu0 %v2274_v42  ;;  %1979 = vmatpush3.bf16.msra.mxu1 %v2275_v43 }
 0x136   :  { %v981_v44 = vpop.f32.mrf.mxu0  ;;  %v1022_v45 = vpop.f32.mrf.mxu1 }
 0x137   :  { %v1023_v47 = vadd.f32 %v1022_v45, %v981_v44 }
 0x138   :  { %v983_v48 = vpop.f32.mrf.mxu0  ;;  %v1024_v49 = vpop.f32.mrf.mxu1 }
 0x139   :  { %v1025_v50 = vadd.f32 %v1024_v49, %v983_v48 }
 0x13a   :  { %v985_v51 = vpop.f32.mrf.mxu0  ;;  %v1026_v52 = vpop.f32.mrf.mxu1 }
 0x13c   :  { %v986_v53 = vpop.f32.mrf.mxu0  ;;  %v1027_v54 = vpop.f32.mrf.mxu1 }
 0x176   :  { %v1063_v55 = vpop.f32.mrf.mxu0  ;;  %v1104_v56 = vpop.f32.mrf.mxu1 }
 0x177   :  { %v1105_v1 = vadd.f32 %v1104_v56, %v1063_v55 }
 0x178   :  { %v1065_v57 = vpop.f32.mrf.mxu0  ;;  %v1106_v58 = vpop.f32.mrf.mxu1 }
 0x179   :  { %v1107_v8 = vadd.f32 %v1106_v58, %v1065_v57 }
 0x17a   :  { %v1067_v59 = vpop.f32.mrf.mxu0  ;;  %v1108_v60 = vpop.f32.mrf.mxu1 }
 0x17c   :  { %v1068_v61 = vpop.f32.mrf.mxu0  ;;  %v1109_v62 = vpop.f32.mrf.mxu1 }
 0x196   :  { %v1305_v5 = vpop.f32.mrf.mxu0  ;;  %v1346_v6 = vpop.f32.mrf.mxu1 }
 0x197   :  { %v1306_v9 = vadd.f32 %v1305_v5, %v1023_v47  ;;  %v1347_v10 = vadd.f32 %v1346_v6, %v1105_v1 }
 0x198   :  { %v1307_v12 = vpop.f32.mrf.mxu0  ;;  %v1348_v13 = vpop.f32.mrf.mxu1 }
 0x199   :  { %v1375_v16 = vadd.f32 %v1358_v3, %v1306_v9  ;;  %v1377_v17 = vadd.f32 %v1366_v4, %v1347_v10  ;;  %v1308_v18 = vadd.f32 %v1307_v12, %v1025_v50  ;;  %v1349_v25 = vadd.f32 %v1348_v13, %v1107_v8 }
 0x19a   :  { %v1309_v19 = vpop.f32.mrf.mxu0  ;;  %v1350_v20 = vpop.f32.mrf.mxu1 }
 0x19b   :  { %v1376_v36 = vadd.f32 %v1362_v7, %v1308_v18  ;;  %v1378_v21 = vadd.f32 %v1370_v11, %v1349_v25  ;;  %v1379_v22 = vmax.f32 %v1375_v16, 0.0  ;;  %v1381_v23 = vmax.f32 %v1377_v17, 0.0 }
 0x19c   :  { %v1310_v24 = vpop.f32.mrf.mxu0  ;;  %v1351_v14 = vpop.f32.mrf.mxu1 }
 0x19d   :  { %v1380_v26 = vmax.f32 %v1376_v36, 0.0  ;;  %v1382_v27 = vmax.f32 %v1378_v21, 0.0  ;;  %v1383_v2 = vpack.c.bf16 %v1379_v22, %v1379_v22  ;;  %v1385_v46 = vpack.c.bf16 %v1381_v23, %v1381_v23 }
 0x19f   :  { %v1384_v28 = vpack.c.bf16 %v1380_v26, %v1380_v26  ;;  %v1386_v29 = vpack.c.bf16 %v1382_v27, %v1382_v27 }
 0x1a1   :  { %1682 = vmatprep.mubr.bf16.mxu0 %v1384_v28  ;;  %1722 = vmatprep.mubr.bf16.mxu1 %v1386_v29 }
 0x1a2   :  { %1683 = vmatmul.mubr.bf16.vlgmr.msra.gmra.mxu0 %v1383_v2  ;;  %1723 = vmatmul.mubr.bf16.vlgmr.msra.gmra.mxu1 %v1385_v46 }
 0x262   :  { %v1958_v30 = vpop.f32.mrf.mxu0  ;;  %v1980_v31 = vpop.f32.mrf.mxu1 }
 0x264   :  { %v1959_v32 = vpop.f32.mrf.mxu0  ;;  %v1981_v33 = vpop.f32.mrf.mxu1 }
 0x265   :  { %v1960_v34 = vadd.f32 %v1959_v32, %v1958_v30  ;;  %v1982_v0 = vadd.f32 %v1981_v33, %v1980_v31 }
 0x266   :  { %v1961_v35 = vpop.f32.mrf.mxu0  ;;  %v1983_v37 = vpop.f32.mrf.mxu1 }
 0x267   :  { %v1685_v38 = vadd.f32 %v1960_v34, %v1909_v15 }
 0x268   :  { %v1962_v39 = vpop.f32.mrf.mxu0  ;;  %v1984_v40 = vpop.f32.mrf.mxu1 }
 0x269   :  { %v1725_v41 = vadd.f32 %v1982_v0, %v1685_v38 }
 0x26b   :  { %1730 = vst [vmem:[#allocation10] sm:$0xff] %v1725_v41 }
 0x26c   :  { %2367 = shalt.err (!%p2364_p10)
}
 0x26d   :  { %1740 = dma.vmem_to_hbm [thread:$0]  %s1738_s15, 128, %s2519_s9, [#allocation4]  }
 0x26e   :  { %2382 = dma.done.wait [#allocation4], 128  }
 0x26f   :  { %2383 = vsyncadd [#allocation4], 4294967168 }
 0x270   :  { %1744 = vsyncpa [#allocation3], 1 }
 0x271   :  { %1745 = vsyncpa [#allocation6], 1 }
 0x272   :  { %1746 = vsyncpa [#allocation9], 1 }
 0x273   :  { %1747 = vsyncpa [#allocation4], 1 }

</bundles_post_ra>
